<compile_context>
chip_gen: v7x
topology: tpu7x:2x2x1
jax: 0.10.0
libtpu: 0.0.40
codegen_flags: <defaults>
</compile_context>

<pallas_src>
import functools

import jax
import jax.numpy as jnp
from jax.experimental import pallas as pl
from jax.experimental.pallas import tpu as pltpu


_BLOCK_BUDGET = 24 * 1024 * 1024   # bytes of double-buffered blocks per grid step
_VMEM_LIMIT = 32 * 1024 * 1024     # scoped VMEM limit (fits v5e/v6e/v7x)


def _round_up(n, m):
    return -(-n // m) * m


def _sublane_pack(dtype):
    # 8 rows for 4-byte, 16 for 2-byte, 32 for 1-byte dtypes.
    return max(8, 32 // jnp.dtype(dtype).itemsize)


def _pick_rows(num_rows, bytes_per_row, pack, total_in_bytes):
    """Largest row tile (multiple of `pack`) whose double-buffered blocks fit."""
    tr = max(pack, (_BLOCK_BUDGET // (2 * bytes_per_row)) // pack * pack)
    if total_in_bytes > (4 << 20):
        # Keep >= 4 grid steps on large inputs so the "parallel" row axis can
        # be split across v7x's two TensorCores (no effect on 1-TC v5e/v6e).
        cap = _round_up(pl.cdiv(num_rows, 4), pack)
        tr = min(tr, max(pack, cap))
    if num_rows <= tr:
        return num_rows            # full-extent block (need not be a pack multiple)
    return tr


# ----------------------------------------------------------------------------
# Packed path: L < 128.  g = 128 // L rows are folded into the lane dimension,
# the kernel sees (rows, g*L) lane-dense tiles and emits (rows, g) means.
# ----------------------------------------------------------------------------
def _avg_pool_packed_kernel(x_ref, avg_ref, *, group, seg_len):
    x = x_ref[...]                                        # (rows, group*seg_len)
    lp = x.shape[-1]
    # 0/1 segment-selection matrix built from iotas (no vector integer div).
    pos = jax.lax.broadcasted_iota(jnp.int32, (lp, group), 0)
    col = jax.lax.broadcasted_iota(jnp.int32, (lp, group), 1)
    lower = col * seg_len
    sel = ((pos >= lower) & (pos < lower + seg_len)).astype(x.dtype)
    # Segment sums on the idle MXU; f32 accumulation for free.
    sums = jnp.dot(x, sel, preferred_element_type=jnp.float32)   # (rows, group)
    avg_ref[...] = (sums * (1.0 / seg_len)).astype(avg_ref.dtype)


# ----------------------------------------------------------------------------
# Wide path: L >= 128 (or not worth packing).  L is tiled on a trailing
# "arbitrary" grid axis; per-row sums accumulate into an f32 VMEM scratch and
# the final means are stored lane-dense as one (1, rows) row per tile.
# ----------------------------------------------------------------------------
def _avg_pool_wide_kernel(x_ref, avg_ref, acc_ref, *, seg_len, col_tile):
    k = pl.program_id(1)

    @pl.when(k == 0)
    def _init():
        acc_ref[...] = jnp.zeros_like(acc_ref)

    xv = x_ref[...].astype(jnp.float32)                   # (rows, col_tile)
    if seg_len % col_tile != 0:
        # Rare ragged last L chunk: zero out-of-range columns so they don't
        # pollute the sums (row-direction OOB needs no mask: those outputs
        # are either masked on store or sliced off in the wrapper).
        col = jax.lax.broadcasted_iota(jnp.int32, xv.shape, 1) + k * col_tile
        xv = jnp.where(col < seg_len, xv, 0.0)

    # Lane-dense accumulation: per-row sums laid along lanes -> the (1, rows)
    # output block is written with full, unmasked vector stores.
    acc_ref[...] += jnp.sum(xv, axis=-1)[None, :]

    @pl.when(k == pl.num_programs(1) - 1)
    def _finish():
        avg_ref[...] = (acc_ref[...] * (1.0 / seg_len)).astype(avg_ref.dtype)


def average_pool(x):
    """x: (B, C, L) -> (x, average_feature) with average_feature: (B, C)."""
    B, C, L = x.shape
    R = B * C
    item = jnp.dtype(x.dtype).itemsize
    pack = _sublane_pack(x.dtype)
    x_rows = x.reshape(R, L)                              # free row-major view

    if L < 128 and (128 // L) >= 2:
        # ---- lane-packed small-L path -------------------------------------
        g = 128 // L
        Rp = _round_up(R, g)
        if Rp != R:
            # Pad a handful of zero rows so R is a multiple of g (their means
            # are dropped below).  Only copies x when B*C isn't a g-multiple.
            x_rows = jnp.pad(x_rows, ((0, Rp - R), (0, 0)))
        R2, Lp = Rp // g, g * L
        x_packed = x_rows.reshape(R2, Lp)

        # Input row (padded to 128 lanes) + padded (tr, g) output row both
        # count against the VMEM block budget.
        bytes_per_row = 128 * item + 128 * item
        tr = _pick_rows(R2, bytes_per_row, pack, R2 * Lp * item)
        grid = (pl.cdiv(R2, tr),)

        avg2 = pl.pallas_call(
            functools.partial(_avg_pool_packed_kernel, group=g, seg_len=L),
            out_shape=jax.ShapeDtypeStruct((R2, g), x.dtype),
            grid=grid,
            in_specs=[pl.BlockSpec((tr, Lp), lambda i: (i, 0))],
            out_specs=pl.BlockSpec((tr, g), lambda i: (i, 0)),
            compiler_params=pltpu.CompilerParams(
                dimension_semantics=("parallel",),
                vmem_limit_bytes=_VMEM_LIMIT),
        )(x_packed)
        avg = avg2.reshape(Rp)[:R].reshape(B, C)
    else:
        # ---- wide / large-L path -------------------------------------------
        full_row_bytes = _round_up(L, 128) * item
        if 2 * pack * full_row_bytes <= _BLOCK_BUDGET:
            tl = L                                        # whole L in one chunk
        else:
            # Tile L so even minimum-height row tiles fit the budget.
            tl = max(128, (_BLOCK_BUDGET // (2 * pack * item)) // 128 * 128)
        n_l = pl.cdiv(L, tl)

        bytes_per_row = _round_up(tl, 128) * item + 16    # + lane-dense out/acc
        tr = _pick_rows(R, bytes_per_row, pack, R * L * item)
        n_r = pl.cdiv(R, tr)

        out = pl.pallas_call(
            functools.partial(_avg_pool_wide_kernel, seg_len=L, col_tile=tl),
            out_shape=jax.ShapeDtypeStruct((n_r, tr), x.dtype),
            grid=(n_r, n_l),
            in_specs=[pl.BlockSpec((tr, tl), lambda i, k: (i, k))],
            out_specs=pl.BlockSpec((1, tr), lambda i, k: (i, 0)),
            scratch_shapes=[pltpu.VMEM((1, tr), jnp.float32)],
            compiler_params=pltpu.CompilerParams(
                dimension_semantics=("parallel", "arbitrary"),
                vmem_limit_bytes=_VMEM_LIMIT),
        )(x_rows)
        # Trailing (n_r*tr - R) entries are garbage from the partial last row
        # tile and are sliced off here.
        avg = out.reshape(n_r * tr)[:R].reshape(B, C)

    # Pass x through untouched (no kernel copy, no extra HBM round-trip).
    return x, avg


if __name__ == "__main__":
    key = jax.random.PRNGKey(0)

    # Primary shape per the module's AvgPool1d (N, C, L) convention: small L
    # exercises the lane-packed path.
    B, C, L = 2, 4, 16
    x = jax.random.normal(key, (B, C, L), dtype=jnp.float32)
    out_x, avg = average_pool(x)
    jax.block_until_ready((out_x, avg))
    assert out_x.shape == (B, C, L) and avg.shape == (B, C)
    assert jnp.allclose(out_x, x), "pass-through mismatch"
    assert jnp.allclose(avg, jnp.mean(x, axis=-1), atol=1e-6, rtol=1e-6), "avg mismatch (packed)"

    # Also exercise the wide (L >= 128, lane-dense output) path.
    x2 = jax.random.normal(jax.random.PRNGKey(1), (2, 4, 256), dtype=jnp.float32)
    _, avg2 = average_pool(x2)
    jax.block_until_ready(avg2)
    assert jnp.allclose(avg2, jnp.mean(x2, axis=-1), atol=1e-5, rtol=1e-5), "avg mismatch (wide)"

    # And the packed path with row padding (B*C not a multiple of 128//L).
    x3 = jax.random.normal(jax.random.PRNGKey(2), (3, 3, 16), dtype=jnp.float32)
    _, avg3 = average_pool(x3)
    jax.block_until_ready(avg3)
    assert jnp.allclose(avg3, jnp.mean(x3, axis=-1), atol=1e-6, rtol=1e-6), "avg mismatch (padded)"

    print("KERNEL_OK")
</pallas_src>

<mosaic_0001>
module attributes {stable_mosaic.version = 11 : i64} {
  func.func @_avg_pool_packed_kernel(%arg0: i32, %arg1: memref<1x128xf32, #tpu.memory_space<vmem>>, %arg2: memref<1x8xf32, #tpu.memory_space<vmem>>) attributes {dimension_semantics = [#tpu.dimension_semantics<parallel>], iteration_bounds = array<i64: 1>, scalar_prefetch = 0 : i64, scratch_operands = 0 : i64, tpu.core_type = #tpu.core_type<tc>, window_params = [{transform_indices = @transform_0, window_bounds = array<i64: 1, 128>}, {transform_indices = @transform_1, window_bounds = array<i64: 1, 8>}]} {
    %c0 = arith.constant 0 : index
    %c0_0 = arith.constant 0 : index
    %0 = vector.load %arg1[%c0, %c0_0] : memref<1x128xf32, #tpu.memory_space<vmem>>, vector<1x128xf32>
    %1 = tpu.iota {dimensions = array<i32: 0>} : vector<128x8xi32>
    %2 = tpu.iota {dimensions = array<i32: 1>} : vector<128x8xi32>
    %c16_i32 = arith.constant 16 : i32
    %3 = vector.broadcast %c16_i32 : i32 to vector<128x8xi32>
    %4 = arith.muli %2, %3 : vector<128x8xi32>
    %5 = arith.cmpi sge, %1, %4 : vector<128x8xi32>
    %c16_i32_1 = arith.constant 16 : i32
    %6 = vector.broadcast %c16_i32_1 : i32 to vector<128x8xi32>
    %7 = arith.addi %4, %6 : vector<128x8xi32>
    %8 = arith.cmpi slt, %1, %7 : vector<128x8xi32>
    %9 = arith.andi %5, %8 : vector<128x8xi1>
    %10 = arith.extui %9 : vector<128x8xi1> to vector<128x8xi32>
    %11 = arith.sitofp %10 : vector<128x8xi32> to vector<128x8xf32>
    %cst = arith.constant dense<0.000000e+00> : vector<1x8xf32>
    %12 = tpu.matmul %0, %11, %cst {dimension_numbers = #tpu.dot_dimension_numbers<[1], [0], [0], [1], [0, 0, 1, 1], [], []>} : vector<1x128xf32>, vector<128x8xf32>, vector<1x8xf32> -> vector<1x8xf32>
    %cst_2 = arith.constant 6.250000e-02 : f32
    %13 = vector.broadcast %cst_2 : f32 to vector<1x8xf32>
    %14 = arith.mulf %12, %13 : vector<1x8xf32>
    %c0_3 = arith.constant 0 : index
    %c0_4 = arith.constant 0 : index
    %15 = vector.load %arg2[%c0_3, %c0_4] : memref<1x8xf32, #tpu.memory_space<vmem>>, vector<1x8xf32>
    tpu.vector_store %arg2[%c0_3, %c0_4], %14 {strides = array<i32>} : memref<1x8xf32, #tpu.memory_space<vmem>>, vector<1x8xf32>,
    return
  }
  func.func @transform_0(%arg0: i32) -> (i32, i32) {
    %c0_i32 = arith.constant 0 : i32
    %c0_i32_0 = arith.constant 0 : i32
    return %arg0, %c0_i32 : i32, i32
  }
  func.func @transform_1(%arg0: i32) -> (i32, i32) {
    %c0_i32 = arith.constant 0 : i32
    %c0_i32_0 = arith.constant 0 : i32
    return %arg0, %c0_i32 : i32, i32
  }
}

</mosaic_0001>

<bundles_post_ra>
// kernel: tpu_custom_call.1
= control target key start
LH: loop header
LB: loop body
LE: loop exit
PB: predicated region body
PF: predicated region fallthrough
CT: control target
= control target key end

     0   :  { %6 = vsyncpa [#allocation3], 0  ;;  %s527_s0 = inlined_call_operand.hbm [shape: f32[1,128], index: 0, kind: input, shape index: {}]   ;;  %s528_s1 = inlined_call_operand.hbm [shape: f32[1,8], index: 1, kind: output, shape index: {}]  }
   0x1   :  { %7 = vsyncpa [#allocation4], 0  ;;  %s373_s6 = smov [#allocation2]   ;;  %s325_s10 = scalar_lea.hbm %s527_s0, 16 }
   0x2   :  { %s14_s7 = sshll.u32 %s373_s6, 4  ;;  %p326_p0 = scmp.ne.s32.totalorder %s527_s0, %s325_s10  ;;  %s15_s7 = int_to_ptr.vmem [resolvable:$true] %s14_s7 }
   0x3   :  { %p329_p1 = scmp.lt.u32.totalorder %s325_s10, %s527_s0 }
   0x5   :  { %p331_p2 = pnand %p329_p1, %p326_p0 }
   0x7   :  { %334 = shalt.err (!%p331_p2)
}
   0x8   :  { %s335_s15 = scalar_lea.vmem %s15_s7, 16  ;;  %s339_s16 = scalar_lea.vmem %s15_s7, 32 }
   0x9   :  { %p336_p3 = scmp.ne.s32.totalorder %s15_s7, %s335_s15  ;;  %p340_p4 = scmp.lt.s32.totalorder %s15_s7, %s15_s7 }
   0xa   :  { %p341_p5 = scmp.lt.s32.totalorder %s339_s16, %s335_s15 }
   0xc   :  { %p342_p6 = por %p341_p5, %p340_p4 }
   0xe   :  { %p343_p7 = pnand %p342_p6, %p336_p3 }
  0x10   :  { %346 = shalt.err (!%p343_p7)
}
  0x11   :  { %17 = dma.hbm_to_vmem [thread:$0]  %s527_s0, 16, %s15_s7, [#allocation3]   ;;  %v22_v0 = vlaneseq }
  0x12   :  { %369 = dma.done.wait [#allocation3], 16  }
  0x13   :  { %370 = vsyncadd [#allocation3], 4294967280  ;;  %v374_v1 = vmov 0.0|0.0   ;;  %v402_v2 = vshrl.u32 %v22_v0, 7  ;;  %v40_v3 = vand.u32 127, %v22_v0  ;;  %vm375_vm0 = vmmov 0  }
  0x14   :  { %295 = vmatprep.subr.bf16.mxu0 %v374_v1  ;;  %v376_v4 = vmov 0.0   ;;  %v377_v13 = vmov 1.0|1.0   ;;  %v21_v30 = vld [vmem:[#allocation2] sm:$0x1]  ;;  %s378_s0 = smov [#allocation5]  }
  0x15   :  { %292 = vmatprep.mubr.msk.f32.mxu0 %vm375_vm0, %v376_v4  ;;  %v24_v5 = vadd.s32 8, %v402_v2  ;;  %v405_v6 = vmul.u32 16, %v40_v3  ;;  %v25_v7 = vadd.s32 16, %v402_v2  ;;  %v26_v9 = vadd.s32 24, %v402_v2  ;;  %s202_s19 = sshll.u32 %s378_s0, 4  ;;  %s203_s19 = int_to_ptr.vmem [resolvable:$true] %s202_s19 }
  0x16   :  { %v27_v10 = vadd.s32 32, %v402_v2  ;;  %v28_v11 = vadd.s32 40, %v402_v2  ;;  %v29_v12 = vadd.s32 48, %v402_v2  ;;  %v30_v14 = vadd.s32 56, %v402_v2  ;;  %s347_s20 = scalar_lea.vmem %s203_s19, 16  ;;  %s351_s21 = scalar_lea.vmem %s203_s19, 32 }
  0x17   :  { %vm42_vm1 = vcmp.ge.s32.totalorder %v402_v2, %v405_v6  ;;  %v411_v8 = vadd.s32 16, %v405_v6  ;;  %vm43_vm2 = vcmp.ge.s32.totalorder %v24_v5, %v405_v6  ;;  %vm44_vm6 = vcmp.ge.s32.totalorder %v25_v7, %v405_v6  ;;  %p348_p8 = scmp.ne.s32.totalorder %s203_s19, %s347_s20  ;;  %p352_p9 = scmp.lt.s32.totalorder %s203_s19, %s203_s19 }
  0x18   :  { %vm45_vm9 = vcmp.ge.s32.totalorder %v26_v9, %v405_v6  ;;  %vm46_vm13 = vcmp.ge.s32.totalorder %v27_v10, %v405_v6  ;;  %vm47_vm0 = vcmp.ge.s32.totalorder %v28_v11, %v405_v6  ;;  %v31_v15 = vadd.s32 64, %v402_v2  ;;  %p353_p10 = scmp.lt.s32.totalorder %s351_s21, %s347_s20 }
  0x19   :  { %vm59_vm3 = vcmp.lt.s32.totalorder %v402_v2, %v411_v8  ;;  %vm60_vm4 = vcmp.lt.s32.totalorder %v24_v5, %v411_v8  ;;  %vm61_vm7 = vcmp.lt.s32.totalorder %v25_v7, %v411_v8  ;;  %vm62_vm10 = vcmp.lt.s32.totalorder %v26_v9, %v411_v8 }
  0x1a   :  { %vm75_vm5 = vmand %vm42_vm1, %vm59_vm3  ;;  %vm63_vm14 = vcmp.lt.s32.totalorder %v27_v10, %v411_v8  ;;  %vm64_vm1 = vcmp.lt.s32.totalorder %v28_v11, %v411_v8  ;;  %v32_v17 = vadd.s32 72, %v402_v2  ;;  %v33_v18 = vadd.s32 80, %v402_v2  ;;  %p354_p11 = por %p353_p10, %p352_p9 }
  0x1b   :  { %vm76_vm8 = vmand %vm43_vm2, %vm60_vm4  ;;  %vm48_vm4 = vcmp.ge.s32.totalorder %v29_v12, %v405_v6  ;;  %v34_v20 = vadd.s32 88, %v402_v2  ;;  %v35_v23 = vadd.s32 96, %v402_v2  ;;  %v36_v25 = vadd.s32 104, %v402_v2 }
  0x1c   :  { %vm296_vm11 = vmpackc.low %vm76_vm8, %vm75_vm5  ;;  %vm65_vm5 = vcmp.lt.s32.totalorder %v29_v12, %v411_v8  ;;  %vm66_vm8 = vcmp.lt.s32.totalorder %v30_v14, %v411_v8  ;;  %v37_v28 = vadd.s32 112, %v402_v2  ;;  %v38_v29 = vadd.s32 120, %v402_v2  ;;  %p355_p12 = pnand %p354_p11, %p348_p8 }
  0x1d   :  { %297 = vmatpush3.bf16.msk.msra.mxu0 %vm296_vm11, %v377_v13  ;;  %vm77_vm12 = vmand %vm44_vm6, %vm61_vm7  ;;  %vm49_vm7 = vcmp.ge.s32.totalorder %v30_v14, %v405_v6  ;;  %vm50_vm11 = vcmp.ge.s32.totalorder %v31_v15, %v405_v6 }
  0x1e   :  { %298 = vmatprep.subr.bf16.mxu0 %v374_v1  ;;  %vm78_vm15 = vmand %vm45_vm9, %vm62_vm10 }
  0x1f   :  { %vm299_vm2 = vmpackc.low %vm78_vm15, %vm77_vm12  ;;  %vm67_vm12 = vcmp.lt.s32.totalorder %v31_v15, %v411_v8  ;;  %vm68_vm15 = vcmp.lt.s32.totalorder %v32_v17, %v411_v8 }
  0x20   :  { %vm433_vm3 = vmand %vm46_vm13, %vm63_vm14  ;;  %vm51_vm14 = vcmp.ge.s32.totalorder %v32_v17, %v405_v6 }
  0x21   :  { %300 = vmatpush3.bf16.msk.msra.mxu0 %vm299_vm2, %v377_v13  ;;  %vm80_vm6 = vmand %vm47_vm0, %vm64_vm1  ;;  %vm52_vm2 = vcmp.ge.s32.totalorder %v33_v18, %v405_v6 }
  0x22   :  { %301 = vmatprep.subr.bf16.mxu0 %v374_v1  ;;  %vm302_vm9 = vmpackc.low %vm80_vm6, %vm433_vm3  ;;  %vm69_vm3 = vcmp.lt.s32.totalorder %v33_v18, %v411_v8  ;;  %vm70_vm6 = vcmp.lt.s32.totalorder %v34_v20, %v411_v8 }
  0x23   :  { %vm447_vm10 = vmand %vm48_vm4, %vm65_vm5  ;;  %vm53_vm5 = vcmp.ge.s32.totalorder %v34_v20, %v405_v6 }
  0x24   :  { %vm454_vm13 = vmand %vm49_vm7, %vm66_vm8 }
  0x25   :  { %303 = vmatpush3.bf16.msk.msra.mxu0 %vm302_vm9, %v377_v13  ;;  %vm305_vm0 = vmpackc.low %vm454_vm13, %vm447_vm10  ;;  %vm54_vm10 = vcmp.ge.s32.totalorder %v35_v23, %v405_v6  ;;  %vm72_vm13 = vcmp.lt.s32.totalorder %v36_v25, %v411_v8 }
  0x26   :  { %304 = vmatprep.subr.bf16.mxu0 %v374_v1  ;;  %vm466_vm1 = vmand %vm50_vm11, %vm67_vm12  ;;  %vm71_vm11 = vcmp.lt.s32.totalorder %v35_v23, %v411_v8  ;;  %vm55_vm12 = vcmp.ge.s32.totalorder %v36_v25, %v405_v6 }
  0x27   :  { %vm473_vm4 = vmand %vm51_vm14, %vm68_vm15 }
  0x28   :  { %vm308_vm7 = vmpackc.low %vm473_vm4, %vm466_vm1  ;;  %vm56_vm1 = vcmp.ge.s32.totalorder %v37_v28, %v405_v6  ;;  %vm74_vm4 = vcmp.lt.s32.totalorder %v38_v29, %v411_v8 }
  0x29   :  { %306 = vmatpush3.bf16.msk.msra.mxu0 %vm305_vm0, %v377_v13  ;;  %vm485_vm8 = vmand %vm52_vm2, %vm69_vm3  ;;  %vm73_vm2 = vcmp.lt.s32.totalorder %v37_v28, %v411_v8  ;;  %vm57_vm3 = vcmp.ge.s32.totalorder %v38_v29, %v405_v6 }
  0x2a   :  { %307 = vmatprep.subr.bf16.mxu0 %v374_v1  ;;  %vm490_vm9 = vmand %vm53_vm5, %vm70_vm6 }
  0x2b   :  { %vm311_vm14 = vmpackc.low %vm490_vm9, %vm485_vm8  ;;  %vm194_vm9 = vcmask 57344  }
  0x2c   :  { %vm87_vm15 = vmand %vm54_vm10, %vm71_vm11 }
  0x2d   :  { %309 = vmatpush3.bf16.msk.msra.mxu0 %vm308_vm7, %v377_v13  ;;  %vm88_vm0 = vmand %vm55_vm12, %vm72_vm13 }
  0x2e   :  { %310 = vmatprep.subr.bf16.mxu0 %v374_v1  ;;  %vm314_vm5 = vmpackc.low %vm88_vm0, %vm87_vm15 }
  0x2f   :  { %vm89_vm6 = vmand %vm56_vm1, %vm73_vm2 }
  0x30   :  { %vm90_vm8 = vmand %vm57_vm3, %vm74_vm4 }
  0x31   :  { %312 = vmatpush3.bf16.msk.msra.mxu0 %vm311_vm14, %v377_v13  ;;  %vm317_vm7 = vmpackc.low %vm90_vm8, %vm89_vm6 }
  0x32   :  { %313 = vmatprep.subr.bf16.mxu0 %v374_v1 }
  0x35   :  { %315 = vmatpush3.bf16.msk.msra.mxu0 %vm314_vm5, %v377_v13 }
  0x36   :  { %316 = vmatprep.subr.bf16.mxu0 %v374_v1 }
  0x39   :  { %318 = vmatpush3.bf16.msk.msra.mxu0 %vm317_vm7, %v377_v13 }
  0x3c   :  { %293 = vmatmul.mubr.f32.vlgmr.msra.gmra.mrb[0].mxu0 %v21_v30 }
 0x10f   :  { %v189_v31 = vpop.f32.mrb[0].mxu0 }
 0x110   :  { %v193_v32 = vmul.f32 0.0625, %v189_v31  ;;  %v294_v33 = vpop.f32.mrb[1].mxu0 }
 0x112   :  { %195 = vst.msk [vmem:[#allocation5] sm:$0x1] %vm194_vm9, %v193_v32 }
 0x113   :  { %358 = shalt.err (!%p355_p12)
}
 0x114   :  { %s359_s24 = scalar_lea.hbm %s528_s1, 16 }
 0x115   :  { %p360_p13 = scmp.ne.s32.totalorder %s528_s1, %s359_s24  ;;  %p363_p0 = scmp.lt.u32.totalorder %s359_s24, %s528_s1 }
 0x117   :  { %p365_p1 = pnand %p363_p0, %p360_p13 }
 0x119   :  { %368 = shalt.err (!%p365_p1)
}
 0x11a   :  { %205 = dma.vmem_to_hbm [thread:$0]  %s203_s19, 16, %s528_s1, [#allocation4]  }
 0x11b   :  { %371 = dma.done.wait [#allocation4], 16  }
 0x11c   :  { %372 = vsyncadd [#allocation4], 4294967280 }
 0x11d   :  { %209 = vsyncpa [#allocation3], 1 }
 0x11e   :  { %210 = vsyncpa [#allocation4], 1 }

</bundles_post_ra>
